<compile_context>
chip_gen: v6e
topology: v6e:2x2x1
jax: 0.10.0
libtpu: 0.0.40
codegen_flags: <defaults>
</compile_context>

<pallas_src>
import jax
import jax.numpy as jnp
from jax.experimental import pallas as pl
from jax.experimental.pallas import tpu as pltpu

N_TRACK = 10
N_WAYPOINTS = 3

HALF_FEAT = N_TRACK * 2            # 20  (one boundary, flattened)
IN_FEAT = 2 * HALF_FEAT            # 40
H1 = 256
H2 = 128
OUT_FEAT = N_WAYPOINTS * 2         # 6
OUT_PAD = 128                      # pad 6 -> 128 lanes (zero cols in W3/b3)

B_TILE_MAX = 256                   # batch rows per grid step for large batches


def _round_up(x, m):
    return ((x + m - 1) // m) * m


def mlp_kernel(xl_ref, xr_ref, w1a_ref, w1b_ref, b1_ref,
               w2_ref, b2_ref, w3_ref, b3_ref, o_ref):
    # xl/xr: (B_TILE, 20) f32; weights pre-transposed as (in, out).
    # Fused concat: [xl | xr] @ W1 == xl @ W1[:20] + xr @ W1[20:].
    h1 = (jnp.dot(xl_ref[...], w1a_ref[...], preferred_element_type=jnp.float32)
          + jnp.dot(xr_ref[...], w1b_ref[...], preferred_element_type=jnp.float32)
          + b1_ref[...])
    h1 = jnp.maximum(h1, 0.0)
    h2 = jnp.dot(h1, w2_ref[...], preferred_element_type=jnp.float32) + b2_ref[...]
    h2 = jnp.maximum(h2, 0.0)
    out = jnp.dot(h2, w3_ref[...], preferred_element_type=jnp.float32) + b3_ref[...]
    o_ref[...] = out                                   # (B_TILE, OUT_PAD), lane-dense store


def _const_spec(shape):
    # Weight/bias slab resident in VMEM for the whole grid (index never changes).
    return pl.BlockSpec(shape, lambda i: (0,) * len(shape))


def mlp_planner(track_left, track_right, params):
    """track_left/track_right: (b, n_track, 2) -> waypoints (b, n_waypoints, 2)."""
    w1a, w1b, b1, w2, b2, w3p, b3p = params
    b = track_left.shape[0]

    # Flatten each boundary to (b, 20); concat is fused into the kernel.
    xl = track_left.reshape(b, HALF_FEAT).astype(jnp.float32)
    xr = track_right.reshape(b, HALF_FEAT).astype(jnp.float32)

    # Adaptive batch tiling: single small tile for tiny batches, 256-row tiles
    # for throughput at large batch.
    b_tile = min(B_TILE_MAX, _round_up(b, 8))
    b_pad = _round_up(b, b_tile)
    if b_pad != b:
        xl = jnp.pad(xl, ((0, b_pad - b), (0, 0)))
        xr = jnp.pad(xr, ((0, b_pad - b), (0, 0)))

    out = pl.pallas_call(
        mlp_kernel,
        out_shape=jax.ShapeDtypeStruct((b_pad, OUT_PAD), jnp.float32),
        grid=(b_pad // b_tile,),
        in_specs=[
            pl.BlockSpec((b_tile, HALF_FEAT), lambda i: (i, 0)),
            pl.BlockSpec((b_tile, HALF_FEAT), lambda i: (i, 0)),
            _const_spec((HALF_FEAT, H1)), _const_spec((HALF_FEAT, H1)),
            _const_spec((1, H1)),
            _const_spec((H1, H2)), _const_spec((1, H2)),
            _const_spec((H2, OUT_PAD)), _const_spec((1, OUT_PAD)),
        ],
        out_specs=pl.BlockSpec((b_tile, OUT_PAD), lambda i: (i, 0)),
        compiler_params=pltpu.CompilerParams(
            dimension_semantics=("parallel",),
            vmem_limit_bytes=32 * 1024 * 1024,
        ),
    )(xl, xr, w1a, w1b, b1, w2, b2, w3p, b3p)

    return out[:b, :OUT_FEAT].reshape(b, N_WAYPOINTS, 2)


def init_params(key):
    """Random params at the logical PyTorch shapes, then split / lane-padded for the kernel."""
    k1, k2, k3 = jax.random.split(key, 3)
    scale = 0.1

    w1 = (scale * jax.random.normal(k1, (IN_FEAT, H1))).astype(jnp.float32)   # (in, out) = W.T
    b1 = jnp.zeros((1, H1), jnp.float32)
    w2 = (scale * jax.random.normal(k2, (H1, H2))).astype(jnp.float32)
    b2 = jnp.zeros((1, H2), jnp.float32)
    w3 = (scale * jax.random.normal(k3, (H2, OUT_FEAT))).astype(jnp.float32)
    b3 = jnp.zeros((1, OUT_FEAT), jnp.float32)

    # Split W1 for the fused concat; zero-pad W3/b3 columns for lane-dense output
    # (padded columns are sliced away in the wrapper -> identical math).
    w1a = w1[:HALF_FEAT]
    w1b = w1[HALF_FEAT:]
    w3p = jnp.pad(w3, ((0, 0), (0, OUT_PAD - OUT_FEAT)))
    b3p = jnp.pad(b3, ((0, 0), (0, OUT_PAD - OUT_FEAT)))
    return [w1a, w1b, b1, w2, b2, w3p, b3p], (w1, b1, w2, b2, w3, b3)


def reference_forward(track_left, track_right, logical_params):
    w1, b1, w2, b2, w3, b3 = logical_params
    b = track_left.shape[0]
    track = jnp.concatenate([track_left, track_right], axis=1).astype(jnp.float32)
    x = track.reshape(b, IN_FEAT)
    hp = jax.lax.Precision.HIGHEST
    h1 = jnp.maximum(jnp.dot(x, w1, precision=hp) + b1, 0.0)
    h2 = jnp.maximum(jnp.dot(h1, w2, precision=hp) + b2, 0.0)
    out = jnp.dot(h2, w3, precision=hp) + b3
    return out.reshape(b, N_WAYPOINTS, 2)


if __name__ == "__main__":
    key = jax.random.PRNGKey(0)
    kp, kl, kr = jax.random.split(key, 3)
    params, logical_params = init_params(kp)

    b = 2
    track_left = jax.random.normal(kl, (b, N_TRACK, 2), dtype=jnp.float32)
    track_right = jax.random.normal(kr, (b, N_TRACK, 2), dtype=jnp.float32)

    waypoints = mlp_planner(track_left, track_right, params)
    waypoints = jax.block_until_ready(waypoints)

    assert waypoints.shape == (b, N_WAYPOINTS, 2), waypoints.shape
    assert bool(jnp.all(jnp.isfinite(waypoints)))

    ref = reference_forward(track_left, track_right, logical_params)
    assert bool(jnp.allclose(waypoints, ref, rtol=2e-2, atol=1e-4)), (
        jnp.max(jnp.abs(waypoints - ref)))

    # Also exercise a larger, non-multiple batch to cover the tiled path.
    kb = jax.random.PRNGKey(1)
    kl2, kr2 = jax.random.split(kb)
    b2_ = 300
    tl2 = jax.random.normal(kl2, (b2_, N_TRACK, 2), dtype=jnp.float32)
    tr2 = jax.random.normal(kr2, (b2_, N_TRACK, 2), dtype=jnp.float32)
    wp2 = jax.block_until_ready(mlp_planner(tl2, tr2, params))
    ref2 = reference_forward(tl2, tr2, logical_params)
    assert wp2.shape == (b2_, N_WAYPOINTS, 2)
    assert bool(jnp.allclose(wp2, ref2, rtol=2e-2, atol=1e-4)), (
        jnp.max(jnp.abs(wp2 - ref2)))

    print("KERNEL_OK")
</pallas_src>

<mosaic_0001>
module attributes {stable_mosaic.version = 11 : i64} {
  func.func @mlp_kernel(%arg0: i32, %arg1: memref<8x20xf32, #tpu.memory_space<vmem>>, %arg2: memref<8x20xf32, #tpu.memory_space<vmem>>, %arg3: memref<20x256xf32, #tpu.memory_space<vmem>>, %arg4: memref<20x256xf32, #tpu.memory_space<vmem>>, %arg5: memref<1x256xf32, #tpu.memory_space<vmem>>, %arg6: memref<256x128xf32, #tpu.memory_space<vmem>>, %arg7: memref<1x128xf32, #tpu.memory_space<vmem>>, %arg8: memref<128x128xf32, #tpu.memory_space<vmem>>, %arg9: memref<1x128xf32, #tpu.memory_space<vmem>>, %arg10: memref<8x128xf32, #tpu.memory_space<vmem>>) attributes {dimension_semantics = [#tpu.dimension_semantics<parallel>], iteration_bounds = array<i64: 1>, scalar_prefetch = 0 : i64, scratch_operands = 0 : i64, tpu.core_type = #tpu.core_type<tc>, window_params = [{transform_indices = @transform_0, window_bounds = array<i64: 8, 20>}, {transform_indices = @transform_1, window_bounds = array<i64: 8, 20>}, {pipeline_mode = #tpu.pipeline_mode<synchronous>, transform_indices = @transform_2, window_bounds = array<i64: 20, 256>}, {pipeline_mode = #tpu.pipeline_mode<synchronous>, transform_indices = @transform_3, window_bounds = array<i64: 20, 256>}, {pipeline_mode = #tpu.pipeline_mode<synchronous>, transform_indices = @transform_4, window_bounds = array<i64: 1, 256>}, {pipeline_mode = #tpu.pipeline_mode<synchronous>, transform_indices = @transform_5, window_bounds = array<i64: 256, 128>}, {pipeline_mode = #tpu.pipeline_mode<synchronous>, transform_indices = @transform_6, window_bounds = array<i64: 1, 128>}, {pipeline_mode = #tpu.pipeline_mode<synchronous>, transform_indices = @transform_7, window_bounds = array<i64: 128, 128>}, {pipeline_mode = #tpu.pipeline_mode<synchronous>, transform_indices = @transform_8, window_bounds = array<i64: 1, 128>}, {transform_indices = @transform_9, window_bounds = array<i64: 8, 128>}]} {
    %c0 = arith.constant 0 : index
    %c0_0 = arith.constant 0 : index
    %0 = vector.load %arg1[%c0, %c0_0] : memref<8x20xf32, #tpu.memory_space<vmem>>, vector<8x20xf32>
    %c0_1 = arith.constant 0 : index
    %c0_2 = arith.constant 0 : index
    %1 = vector.load %arg3[%c0_1, %c0_2] : memref<20x256xf32, #tpu.memory_space<vmem>>, vector<20x256xf32>
    %cst = arith.constant dense<0.000000e+00> : vector<8x256xf32>
    %2 = tpu.matmul %0, %1, %cst {dimension_numbers = #tpu.dot_dimension_numbers<[1], [0], [0], [1], [0, 0, 1, 1], [], []>} : vector<8x20xf32>, vector<20x256xf32>, vector<8x256xf32> -> vector<8x256xf32>
    %c0_3 = arith.constant 0 : index
    %c0_4 = arith.constant 0 : index
    %3 = vector.load %arg2[%c0_3, %c0_4] : memref<8x20xf32, #tpu.memory_space<vmem>>, vector<8x20xf32>
    %c0_5 = arith.constant 0 : index
    %c0_6 = arith.constant 0 : index
    %4 = vector.load %arg4[%c0_5, %c0_6] : memref<20x256xf32, #tpu.memory_space<vmem>>, vector<20x256xf32>
    %cst_7 = arith.constant dense<0.000000e+00> : vector<8x256xf32>
    %5 = tpu.matmul %3, %4, %cst_7 {dimension_numbers = #tpu.dot_dimension_numbers<[1], [0], [0], [1], [0, 0, 1, 1], [], []>} : vector<8x20xf32>, vector<20x256xf32>, vector<8x256xf32> -> vector<8x256xf32>
    %6 = arith.addf %2, %5 : vector<8x256xf32>
    %c0_8 = arith.constant 0 : index
    %c0_9 = arith.constant 0 : index
    %7 = vector.load %arg5[%c0_8, %c0_9] : memref<1x256xf32, #tpu.memory_space<vmem>>, vector<1x256xf32>
    %8 = vector.broadcast %7 : vector<1x256xf32> to vector<8x256xf32>
    %9 = arith.addf %6, %8 : vector<8x256xf32>
    %cst_10 = arith.constant 0.000000e+00 : f32
    %10 = vector.broadcast %cst_10 : f32 to vector<8x256xf32>
    %11 = arith.maximumf %9, %10 : vector<8x256xf32>
    %c0_11 = arith.constant 0 : index
    %c0_12 = arith.constant 0 : index
    %12 = vector.load %arg6[%c0_11, %c0_12] : memref<256x128xf32, #tpu.memory_space<vmem>>, vector<256x128xf32>
    %cst_13 = arith.constant dense<0.000000e+00> : vector<8x128xf32>
    %13 = tpu.matmul %11, %12, %cst_13 {dimension_numbers = #tpu.dot_dimension_numbers<[1], [0], [0], [1], [0, 0, 1, 1], [], []>} : vector<8x256xf32>, vector<256x128xf32>, vector<8x128xf32> -> vector<8x128xf32>
    %c0_14 = arith.constant 0 : index
    %c0_15 = arith.constant 0 : index
    %14 = vector.load %arg7[%c0_14, %c0_15] : memref<1x128xf32, #tpu.memory_space<vmem>>, vector<1x128xf32>
    %15 = vector.broadcast %14 : vector<1x128xf32> to vector<8x128xf32>
    %16 = arith.addf %13, %15 : vector<8x128xf32>
    %cst_16 = arith.constant 0.000000e+00 : f32
    %17 = vector.broadcast %cst_16 : f32 to vector<8x128xf32>
    %18 = arith.maximumf %16, %17 : vector<8x128xf32>
    %c0_17 = arith.constant 0 : index
    %c0_18 = arith.constant 0 : index
    %19 = vector.load %arg8[%c0_17, %c0_18] : memref<128x128xf32, #tpu.memory_space<vmem>>, vector<128x128xf32>
    %cst_19 = arith.constant dense<0.000000e+00> : vector<8x128xf32>
    %20 = tpu.matmul %18, %19, %cst_19 {dimension_numbers = #tpu.dot_dimension_numbers<[1], [0], [0], [1], [0, 0, 1, 1], [], []>} : vector<8x128xf32>, vector<128x128xf32>, vector<8x128xf32> -> vector<8x128xf32>
    %c0_20 = arith.constant 0 : index
    %c0_21 = arith.constant 0 : index
    %21 = vector.load %arg9[%c0_20, %c0_21] : memref<1x128xf32, #tpu.memory_space<vmem>>, vector<1x128xf32>
    %22 = vector.broadcast %21 : vector<1x128xf32> to vector<8x128xf32>
    %23 = arith.addf %20, %22 : vector<8x128xf32>
    %c0_22 = arith.constant 0 : index
    %c0_23 = arith.constant 0 : index
    %24 = vector.load %arg10[%c0_22, %c0_23] : memref<8x128xf32, #tpu.memory_space<vmem>>, vector<8x128xf32>
    tpu.vector_store %arg10[%c0_22, %c0_23], %23 {strides = array<i32>} : memref<8x128xf32, #tpu.memory_space<vmem>>, vector<8x128xf32>,
    return
  }
  func.func @transform_0(%arg0: i32) -> (i32, i32) {
    %c0_i32 = arith.constant 0 : i32
    %c0_i32_0 = arith.constant 0 : i32
    return %arg0, %c0_i32 : i32, i32
  }
  func.func @transform_1(%arg0: i32) -> (i32, i32) {
    %c0_i32 = arith.constant 0 : i32
    %c0_i32_0 = arith.constant 0 : i32
    return %arg0, %c0_i32 : i32, i32
  }
  func.func @transform_2(%arg0: i32) -> (i32, i32) {
    %c0_i32 = arith.constant 0 : i32
    %c0_i32_0 = arith.constant 0 : i32
    %c0_i32_1 = arith.constant 0 : i32
    return %c0_i32, %c0_i32_0 : i32, i32
  }
  func.func @transform_3(%arg0: i32) -> (i32, i32) {
    %c0_i32 = arith.constant 0 : i32
    %c0_i32_0 = arith.constant 0 : i32
    %c0_i32_1 = arith.constant 0 : i32
    return %c0_i32, %c0_i32_0 : i32, i32
  }
  func.func @transform_4(%arg0: i32) -> (i32, i32) {
    %c0_i32 = arith.constant 0 : i32
    %c0_i32_0 = arith.constant 0 : i32
    %c0_i32_1 = arith.constant 0 : i32
    return %c0_i32, %c0_i32_0 : i32, i32
  }
  func.func @transform_5(%arg0: i32) -> (i32, i32) {
    %c0_i32 = arith.constant 0 : i32
    %c0_i32_0 = arith.constant 0 : i32
    %c0_i32_1 = arith.constant 0 : i32
    return %c0_i32, %c0_i32_0 : i32, i32
  }
  func.func @transform_6(%arg0: i32) -> (i32, i32) {
    %c0_i32 = arith.constant 0 : i32
    %c0_i32_0 = arith.constant 0 : i32
    %c0_i32_1 = arith.constant 0 : i32
    return %c0_i32, %c0_i32_0 : i32, i32
  }
  func.func @transform_7(%arg0: i32) -> (i32, i32) {
    %c0_i32 = arith.constant 0 : i32
    %c0_i32_0 = arith.constant 0 : i32
    %c0_i32_1 = arith.constant 0 : i32
    return %c0_i32, %c0_i32_0 : i32, i32
  }
  func.func @transform_8(%arg0: i32) -> (i32, i32) {
    %c0_i32 = arith.constant 0 : i32
    %c0_i32_0 = arith.constant 0 : i32
    %c0_i32_1 = arith.constant 0 : i32
    return %c0_i32, %c0_i32_0 : i32, i32
  }
  func.func @transform_9(%arg0: i32) -> (i32, i32) {
    %c0_i32 = arith.constant 0 : i32
    %c0_i32_0 = arith.constant 0 : i32
    return %arg0, %c0_i32 : i32, i32
  }
}

</mosaic_0001>

<bundles_post_ra>
// kernel: tpu_custom_call.1
= control target key start
LH: loop header
LB: loop body
LE: loop exit
PB: predicated region body
PF: predicated region fallthrough
CT: control target
= control target key end

     0   :  { %14 = vsyncpa [#allocation3], 0  ;;  %s895_s0 = inlined_call_operand.hbm [shape: f32[8,20], index: 0, kind: input, shape index: {}]   ;;  %s896_s1 = inlined_call_operand.hbm [shape: f32[8,20], index: 1, kind: input, shape index: {}]   ;;  %s897_s2 = inlined_call_operand.hbm [shape: f32[20,256], index: 2, kind: input, shape index: {}]   ;;  %s898_s3 = inlined_call_operand.hbm [shape: f32[20,256], index: 3, kind: input, shape index: {}]   ;;  %s899_s4 = inlined_call_operand.vmem [shape: f32[1,256], index: 4, kind: input, shape index: {}]   ;;  %s900_s5 = inlined_call_operand.hbm [shape: f32[256,128], index: 5, kind: input, shape index: {}]   ;;  %s901_s6 = inlined_call_operand.vmem [shape: f32[1,128], index: 6, kind: input, shape index: {}]   ;;  %s902_s7 = inlined_call_operand.hbm [shape: f32[128,128], index: 7, kind: input, shape index: {}]   ;;  %s903_s8 = inlined_call_operand.vmem [shape: f32[1,128], index: 8, kind: input, shape index: {}]   ;;  %s904_s9 = inlined_call_operand.hbm [shape: f32[8,128], index: 9, kind: output, shape index: {}]  }
   0x1   :  { %15 = vsyncpa [#allocation6], 0 }
   0x2   :  { %16 = vsyncpa [#allocation9], 0 }
   0x3   :  { %17 = vsyncpa [#allocation12], 0 }
   0x4   :  { %18 = vsyncpa [#allocation4], 0  ;;  %s783_s30 = smov [#allocation5]  }
   0x5   :  { %s35_s10 = sshll.u32 %s783_s30, 4  ;;  %s36_s10 = int_to_ptr.vmem [resolvable:$true] %s35_s10 }
   0x6   :  { %s641_s11 = scalar_lea.vmem %s36_s10, 128  ;;  %p646_p1 = scmp.lt.s32.totalorder %s36_s10, %s36_s10 }
   0x7   :  { %p642_p0 = scmp.ne.s32.totalorder %s36_s10, %s641_s11  ;;  %p647_p2 = scmp.lt.s32.totalorder %s641_s11, %s641_s11 }
   0x9   :  { %p648_p3 = por %p647_p2, %p646_p1 }
   0xb   :  { %p649_p4 = pnand %p648_p3, %p642_p0 }
   0xd   :  { %652 = shalt.err (!%p649_p4)
}
   0xe   :  { %38 = dma.hbm_to_vmem [thread:$0]  %s896_s1, 128, %s36_s10, [#allocation6]  }
   0xf   :  { %s784_s14 = smov [#allocation8]   ;;  %s785_s16 = smov [#allocation2]  }
  0x10   :  { %s56_s15 = sshll.u32 %s784_s14, 4  ;;  %s25_s17 = sshll.u32 %s785_s16, 4  ;;  %s57_s15 = int_to_ptr.vmem [resolvable:$true] %s56_s15  ;;  %s26_s17 = int_to_ptr.vmem [resolvable:$true] %s25_s17 }
  0x11   :  { %s661_s18 = scalar_lea.vmem %s57_s15, 768  ;;  %p666_p6 = scmp.lt.s32.totalorder %s57_s15, %s57_s15 }
  0x12   :  { %p662_p5 = scmp.ne.s32.totalorder %s57_s15, %s661_s18  ;;  %p667_p7 = scmp.lt.s32.totalorder %s661_s18, %s661_s18 }
  0x14   :  { %p668_p8 = por %p667_p7, %p666_p6 }
  0x16   :  { %p669_p9 = pnand %p668_p8, %p662_p5 }
  0x18   :  { %672 = shalt.err (!%p669_p9)
}
  0x19   :  { %s786_s19 = smov 256   ;;  %s787_s20 = smov 16  }
  0x1a   :  { %62 = dma.hbm_to_vmem [thread:$0]  %s898_s3, 768, %s57_s15, [#allocation9], %s786_s19, %s786_s19, %s787_s20  }
  0x1b   :  { %s681_s1 = scalar_lea.vmem %s26_s17, 128  ;;  %p686_p11 = scmp.lt.s32.totalorder %s26_s17, %s26_s17 }
  0x1c   :  { %p682_p10 = scmp.ne.s32.totalorder %s26_s17, %s681_s1  ;;  %p687_p12 = scmp.lt.s32.totalorder %s681_s1, %s681_s1 }
  0x1e   :  { %p688_p13 = por %p687_p12, %p686_p11 }
  0x20   :  { %p689_p0 = pnand %p688_p13, %p682_p10 }
  0x22   :  { %692 = shalt.err (!%p689_p0)
}
  0x23   :  { %28 = dma.hbm_to_vmem [thread:$0]  %s895_s0, 128, %s26_s17, [#allocation3]  }
  0x24   :  { %s788_s25 = smov [#allocation7]   ;;  %s789_s27 = smov [#allocation10]  }
  0x25   :  { %s44_s26 = sshll.u32 %s788_s25, 4  ;;  %s70_s28 = sshll.u32 %s789_s27, 4  ;;  %s45_s26 = int_to_ptr.vmem [resolvable:$true] %s44_s26  ;;  %s71_s28 = int_to_ptr.vmem [resolvable:$true] %s70_s28 }
  0x26   :  { %s701_s29 = scalar_lea.vmem %s45_s26, 768  ;;  %p706_p2 = scmp.lt.s32.totalorder %s45_s26, %s45_s26 }
  0x27   :  { %p702_p1 = scmp.ne.s32.totalorder %s45_s26, %s701_s29  ;;  %p707_p3 = scmp.lt.s32.totalorder %s701_s29, %s701_s29 }
  0x29   :  { %p708_p4 = por %p707_p3, %p706_p2 }
  0x2b   :  { %p709_p5 = pnand %p708_p4, %p702_p1 }
  0x2d   :  { %712 = shalt.err (!%p709_p5)
}
  0x2e   :  { %50 = dma.hbm_to_vmem [thread:$0]  %s897_s2, 768, %s45_s26, [#allocation6], %s786_s19, %s786_s19, %s787_s20  }
  0x2f   :  { %s721_s10 = scalar_lea.vmem %s71_s28, 4096  ;;  %p726_p7 = scmp.lt.s32.totalorder %s71_s28, %s71_s28 }
  0x30   :  { %p722_p6 = scmp.ne.s32.totalorder %s71_s28, %s721_s10  ;;  %p727_p8 = scmp.lt.s32.totalorder %s721_s10, %s721_s10 }
  0x32   :  { %p728_p9 = por %p727_p8, %p726_p7 }
  0x34   :  { %p729_p10 = pnand %p728_p9, %p722_p6 }
  0x36   :  { %732 = shalt.err (!%p729_p10)
}
  0x37   :  { %s790_s0 = smov 128   ;;  %s791_s11 = smov 8  }
  0x38   :  { %76 = dma.hbm_to_vmem [thread:$0]  %s900_s5, 4096, %s71_s28, [#allocation9], %s790_s0, %s790_s0, %s791_s11  }
  0x39   :  { %s792_s14 = smov [#allocation11]  }
  0x3a   :  { %s84_s15 = sshll.u32 %s792_s14, 4  ;;  %s85_s15 = int_to_ptr.vmem [resolvable:$true] %s84_s15 }
  0x3b   :  { %s741_s16 = scalar_lea.vmem %s85_s15, 2048  ;;  %p746_p12 = scmp.lt.s32.totalorder %s85_s15, %s85_s15 }
  0x3c   :  { %p742_p11 = scmp.ne.s32.totalorder %s85_s15, %s741_s16  ;;  %p747_p13 = scmp.lt.s32.totalorder %s741_s16, %s741_s16 }
  0x3e   :  { %p748_p0 = por %p747_p13, %p746_p12 }
  0x40   :  { %p749_p1 = pnand %p748_p0, %p742_p11 }
  0x42   :  { %752 = shalt.err (!%p749_p1)
}
  0x43   :  { %90 = dma.hbm_to_vmem [thread:$0]  %s902_s7, 2048, %s85_s15, [#allocation12], %s790_s0, %s790_s0, %s791_s11  }
  0x44   :  { %773 = dma.done.wait [#allocation3], 128  }
  0x45   :  { %774 = vsyncadd [#allocation3], 4294967168 }
  0x46   :  { %775 = dma.done.wait [#allocation6], 896  }
  0x47   :  { %776 = vsyncadd [#allocation6], 4294966400 }
  0x48   :  { %777 = dma.done.wait [#allocation9], 4864  }
  0x49   :  { %778 = vsyncadd [#allocation9], 4294962432 }
  0x4a   :  { %779 = dma.done.wait [#allocation12], 2048  }
  0x4b   :  { %780 = vsyncadd [#allocation12], 4294965248  ;;  %v793_v0 = vmov 0.0   ;;  %vm129_vm0 = vcmask 1043456   ;;  %v124_v1 = vld [vmem:[#allocation8 + $0x28] sm:$0xf]  ;;  %v289_v58 = vlaneseq }
  0x4c   :  { %200 = vmatprep.mubr.f32.mxu0 %v793_v0  ;;  %280 = vmatprep.mubr.f32.mxu1 %v793_v0  ;;  %v117_v2 = vld [vmem:[#allocation7 + $0x28] sm:$0xf]  ;;  %v123_v3 = vld [vmem:[#allocation8 + $0x20] sm:$0xf]  ;;  %v116_v4 = vld [vmem:[#allocation7 + $0x20] sm:$0xf] }
  0x4d   :  { %525 = vmatprep.subr.msk.mxu0 %vm129_vm0, %v124_v1  ;;  %528 = vmatprep.subr.msk.mxu1 %vm129_vm0, %v117_v2  ;;  %v122_v5 = vld [vmem:[#allocation8 + $0x18] sm:$0xff]  ;;  %v115_v6 = vld [vmem:[#allocation7 + $0x18] sm:$0xff]  ;;  %v121_v7 = vld [vmem:[#allocation8 + $0x10] sm:$0xff]  ;;  %vm125_vm1 = vcmask 162816   ;;  %v290_v59 = vshrl.u32 %v289_v58, 7  ;;  %vm794_vm2 = vmmov 0  }
  0x4e   :  { %526 = vmatpush1.msk.msra.mxu0 %vm129_vm0, %v123_v3  ;;  %529 = vmatpush1.msk.msra.mxu1 %vm129_vm0, %v116_v4  ;;  %v114_v8 = vld [vmem:[#allocation7 + $0x10] sm:$0xff]  ;;  %v120_v9 = vld [vmem:[#allocation8 + $0x8] sm:$0xff]  ;;  %v113_v10 = vld [vmem:[#allocation7 + $0x8] sm:$0xff]  ;;  %s795_s21 = smov [#allocation13]  }
  0x4f   :  { %164 = vmatprep.subr.mxu0 %v122_v5  ;;  %244 = vmatprep.subr.mxu1 %v115_v6  ;;  %v119_v11 = vld [vmem:[#allocation8] sm:$0xff]  ;;  %v112_v12 = vld [vmem:[#allocation7] sm:$0xff]  ;;  %v118_v13 = vld [vmem:[#allocation5] sm:$0xff]  ;;  %v291_v60 = vsub.s32 0, %v290_v59  ;;  %v295_v62 = vsub.s32 1, %v290_v59  ;;  %s513_s22 = sshll.u32 %s795_s21, 4  ;;  %s514_s22 = int_to_ptr.vmem [resolvable:$true] %s513_s22 }
  0x50   :  { %165 = vmatpush1.msra.mxu0 %v121_v7  ;;  %245 = vmatpush1.msra.mxu1 %v114_v8  ;;  %v111_v14 = vld [vmem:[#allocation2] sm:$0xff]  ;;  %v334_v15 = vld [vmem:[#allocation10 + $0xf8] sm:$0xff]  ;;  %v332_v19 = vld [vmem:[#allocation10 + $0xe8] sm:$0xff]  ;;  %s753_s1 = scalar_lea.vmem %s514_s22, 128  ;;  %p758_p3 = scmp.lt.s32.totalorder %s514_s22, %s514_s22 }
  0x51   :  { %166 = vmatprep.subr.mxu0 %v120_v9  ;;  %246 = vmatprep.subr.mxu1 %v113_v10  ;;  %v318_v16 = vld [vmem:[#allocation10 + $0x78] sm:$0xff]  ;;  %v333_v17 = vld [vmem:[#allocation10 + $0xf0] sm:$0xff]  ;;  %v316_v20 = vld [vmem:[#allocation10 + $0x68] sm:$0xff]  ;;  %p754_p2 = scmp.ne.s32.totalorder %s514_s22, %s753_s1  ;;  %p759_p4 = scmp.lt.s32.totalorder %s753_s1, %s753_s1 }
  0x52   :  { %167 = vmatpush1.msra.mxu0 %v119_v11  ;;  %247 = vmatpush1.msra.mxu1 %v112_v12  ;;  %v317_v18 = vld [vmem:[#allocation10 + $0x70] sm:$0xff]  ;;  %v331_v21 = vld [vmem:[#allocation10 + $0xe0] sm:$0xff]  ;;  %v330_v23 = vld [vmem:[#allocation10 + $0xd8] sm:$0xff] }
  0x53   :  { %527 = vmatmul.mubr.msk.f32.vlgmr.msra.gmra.mxu0 %vm125_vm1, %v118_v13  ;;  %530 = vmatmul.mubr.msk.f32.vlgmr.msra.gmra.mxu1 %vm125_vm1, %v111_v14  ;;  %v315_v22 = vld [vmem:[#allocation10 + $0x60] sm:$0xff]  ;;  %v314_v24 = vld [vmem:[#allocation10 + $0x58] sm:$0xff]  ;;  %v329_v25 = vld [vmem:[#allocation10 + $0xd0] sm:$0xff]  ;;  %p760_p5 = por %p759_p4, %p758_p3 }
  0x54   :  { %533 = vmatprep.subr.mxu0 %v334_v15  ;;  %585 = vmatprep.subr.mxu1 %v793_v0  ;;  %v313_v26 = vld [vmem:[#allocation10 + $0x50] sm:$0xff]  ;;  %v328_v27 = vld [vmem:[#allocation10 + $0xc8] sm:$0xff]  ;;  %v327_v29 = vld [vmem:[#allocation10 + $0xc0] sm:$0xff] }
  0x55   :  { %534 = vmatpush3.msra.mxu0 %v318_v16  ;;  %v312_v28 = vld [vmem:[#allocation10 + $0x48] sm:$0xff]  ;;  %v311_v30 = vld [vmem:[#allocation10 + $0x40] sm:$0xff]  ;;  %v326_v31 = vld [vmem:[#allocation10 + $0xb8] sm:$0xff]  ;;  %617 = vmatprep.mubr.msk.f32.mxu1 %vm794_vm2, %v793_v0  ;;  %p761_p6 = pnand %p760_p5, %p754_p2 }
  0x56   :  { %535 = vmatprep.subr.mxu0 %v333_v17  ;;  %v310_v32 = vld [vmem:[#allocation10 + $0x38] sm:$0xff]  ;;  %v325_v33 = vld [vmem:[#allocation10 + $0xb0] sm:$0xff]  ;;  %v324_v35 = vld [vmem:[#allocation10 + $0xa8] sm:$0xff] }
  0x57   :  { %536 = vmatpush3.msra.mxu0 %v317_v18  ;;  %v309_v34 = vld [vmem:[#allocation10 + $0x30] sm:$0xff]  ;;  %v308_v36 = vld [vmem:[#allocation10 + $0x28] sm:$0xff]  ;;  %v323_v37 = vld [vmem:[#allocation10 + $0xa0] sm:$0xff] }
  0x58   :  { %537 = vmatprep.subr.mxu0 %v332_v19  ;;  %v307_v38 = vld [vmem:[#allocation10 + $0x20] sm:$0xff]  ;;  %v322_v39 = vld [vmem:[#allocation10 + $0x98] sm:$0xff]  ;;  %v321_v41 = vld [vmem:[#allocation10 + $0x90] sm:$0xff] }
  0x59   :  { %538 = vmatpush3.msra.mxu0 %v316_v20  ;;  %v306_v40 = vld [vmem:[#allocation10 + $0x18] sm:$0xff]  ;;  %v305_v42 = vld [vmem:[#allocation10 + $0x10] sm:$0xff]  ;;  %v320_v43 = vld [vmem:[#allocation10 + $0x88] sm:$0xff] }
  0x5a   :  { %539 = vmatprep.subr.mxu0 %v331_v21  ;;  %v304_v44 = vld [vmem:[#allocation10 + $0x8] sm:$0xff]  ;;  %v319_v45 = vld [vmem:[#allocation10 + $0x80] sm:$0xff]  ;;  %v428_v47 = vld [vmem:[#allocation11 + $0x78] sm:$0xff] }
  0x5b   :  { %540 = vmatpush3.msra.mxu0 %v315_v22  ;;  %v303_v46 = vld [vmem:[#allocation10] sm:$0xff]  ;;  %v427_v48 = vld [vmem:[#allocation11 + $0x70] sm:$0xff]  ;;  %586 = vmatpush3.msra.mxu1 %v428_v47  ;;  %v426_v49 = vld [vmem:[#allocation11 + $0x68] sm:$0xff] }
  0x5c   :  { %541 = vmatprep.subr.mxu0 %v330_v23  ;;  %587 = vmatprep.subr.mxu1 %v793_v0  ;;  %v425_v50 = vld [vmem:[#allocation11 + $0x60] sm:$0xff]  ;;  %v424_v51 = vld [vmem:[#allocation11 + $0x58] sm:$0xff]  ;;  %v423_v52 = vld [vmem:[#allocation11 + $0x50] sm:$0xff] }
  0x5d   :  { %542 = vmatpush3.msra.mxu0 %v314_v24  ;;  %588 = vmatpush3.msra.mxu1 %v427_v48  ;;  %v422_v53 = vld [vmem:[#allocation11 + $0x48] sm:$0xff]  ;;  %v421_v54 = vld [vmem:[#allocation11 + $0x40] sm:$0xff]  ;;  %v420_v55 = vld [vmem:[#allocation11 + $0x38] sm:$0xff] }
  0x5e   :  { %543 = vmatprep.subr.mxu0 %v329_v25  ;;  %589 = vmatprep.subr.mxu1 %v793_v0  ;;  %v419_v56 = vld [vmem:[#allocation11 + $0x30] sm:$0xff]  ;;  %v418_v57 = vld [vmem:[#allocation11 + $0x28] sm:$0xff]  ;;  %v417_v12 = vld [vmem:[#allocation11 + $0x20] sm:$0xff] }
  0x5f   :  { %544 = vmatpush3.msra.mxu0 %v313_v26  ;;  %590 = vmatpush3.msra.mxu1 %v426_v49  ;;  %v287_v61 = vld [vmem:[%s899_s4] sm:$0x3]  ;;  %v416_v13 = vld [vmem:[#allocation11 + $0x18] sm:$0xff]  ;;  %v414_v15 = vld [vmem:[#allocation11 + $0x8] sm:$0xff] }
  0x60   :  { %545 = vmatprep.subr.mxu0 %v328_v27  ;;  %591 = vmatprep.subr.mxu1 %v793_v0  ;;  %v292_v2 = vrot.slane %v287_v61, %v291_v60  ;;  %v296_v4 = vrot.slane %v287_v61, %v295_v62  ;;  %v415_v14 = vld [vmem:[#allocation11 + $0x10] sm:$0xff]  ;;  %v413_v16 = vld [vmem:[#allocation11] sm:$0xff] }
  0x61   :  { %546 = vmatpush3.msra.mxu0 %v312_v28  ;;  %592 = vmatpush3.msra.mxu1 %v425_v50  ;;  %v531_v18 = vld [vmem:[%s901_s6] ss:$0 sm:$0xff] }
  0x62   :  { %547 = vmatprep.subr.mxu0 %v327_v29  ;;  %593 = vmatprep.subr.mxu1 %v793_v0  ;;  %v532_v23 = vld [vmem:[%s903_s8] ss:$0 sm:$0xff] }
  0x63   :  { %548 = vmatpush3.msra.mxu0 %v311_v30  ;;  %594 = vmatpush3.msra.mxu1 %v424_v51 }
  0x64   :  { %549 = vmatprep.subr.mxu0 %v326_v31  ;;  %595 = vmatprep.subr.mxu1 %v793_v0 }
  0x65   :  { %550 = vmatpush3.msra.mxu0 %v310_v32  ;;  %596 = vmatpush3.msra.mxu1 %v423_v52 }
  0x66   :  { %551 = vmatprep.subr.mxu0 %v325_v33  ;;  %597 = vmatprep.subr.mxu1 %v793_v0 }
  0x67   :  { %552 = vmatpush3.msra.mxu0 %v309_v34  ;;  %598 = vmatpush3.msra.mxu1 %v422_v53 }
  0x68   :  { %553 = vmatprep.subr.mxu0 %v324_v35  ;;  %599 = vmatprep.subr.mxu1 %v793_v0 }
  0x69   :  { %554 = vmatpush3.msra.mxu0 %v308_v36  ;;  %600 = vmatpush3.msra.mxu1 %v421_v54 }
  0x6a   :  { %555 = vmatprep.subr.mxu0 %v323_v37  ;;  %601 = vmatprep.subr.mxu1 %v793_v0 }
  0x6b   :  { %556 = vmatpush3.msra.mxu0 %v307_v38  ;;  %602 = vmatpush3.msra.mxu1 %v420_v55 }
  0x6c   :  { %557 = vmatprep.subr.mxu0 %v322_v39  ;;  %603 = vmatprep.subr.mxu1 %v793_v0 }
  0x6d   :  { %558 = vmatpush3.msra.mxu0 %v306_v40  ;;  %604 = vmatpush3.msra.mxu1 %v419_v56 }
  0x6e   :  { %559 = vmatprep.subr.mxu0 %v321_v41  ;;  %605 = vmatprep.subr.mxu1 %v793_v0 }
  0x6f   :  { %560 = vmatpush3.msra.mxu0 %v305_v42  ;;  %606 = vmatpush3.msra.mxu1 %v418_v57 }
  0x70   :  { %561 = vmatprep.subr.mxu0 %v320_v43  ;;  %607 = vmatprep.subr.mxu1 %v793_v0 }
  0x71   :  { %562 = vmatpush3.msra.mxu0 %v304_v44  ;;  %608 = vmatpush3.msra.mxu1 %v417_v12 }
  0x72   :  { %563 = vmatprep.subr.mxu0 %v319_v45  ;;  %609 = vmatprep.subr.mxu1 %v793_v0 }
  0x73   :  { %564 = vmatpush3.msra.mxu0 %v303_v46  ;;  %610 = vmatpush3.msra.mxu1 %v416_v13 }
  0x74   :  { %611 = vmatprep.subr.mxu1 %v793_v0 }
  0x75   :  { %612 = vmatpush3.msra.mxu1 %v415_v14 }
  0x76   :  { %613 = vmatprep.subr.mxu1 %v793_v0 }
  0x77   :  { %614 = vmatpush3.msra.mxu1 %v414_v15 }
  0x78   :  { %615 = vmatprep.subr.mxu1 %v793_v0 }
  0x79   :  { %616 = vmatpush3.msra.mxu1 %v413_v16 }
 0x113   :  { %v202_v63 = vpop.f32.mrf.mxu0  ;;  %v282_v1 = vpop.f32.mrf.mxu1 }
 0x114   :  { %v283_v3 = vadd.f32 %v282_v1, %v202_v63 }
 0x115   :  { %v204_v5 = vpop.f32.mrf.mxu0  ;;  %v284_v6 = vpop.f32.mrf.mxu1 }
 0x116   :  { %v285_v7 = vadd.f32 %v284_v6, %v204_v5  ;;  %v299_v8 = vadd.f32 %v292_v2, %v283_v3 }
 0x118   :  { %v300_v9 = vadd.f32 %v296_v4, %v285_v7  ;;  %v301_v11 = vmax.f32 %v299_v8, 0.0 }
 0x11a   :  { %v302_v10 = vmax.f32 %v300_v9, 0.0 }
 0x11c   :  { %406 = vmatprep.mubr.f32.mxu0 %v302_v10 }
 0x11d   :  { %407 = vmatmul.mubr.f32.vlgmr.msra.gmra.mxu0 %v301_v11 }
 0x1dd   :  { %v565_v17 = vpop.f32.mrf.mxu0 }
 0x1df   :  { %v566_v19 = vpop.f32.mrf.mxu0 }
 0x1e0   :  { %v567_v20 = vadd.f32 %v566_v19, %v565_v17 }
 0x1e2   :  { %v409_v21 = vadd.f32 %v567_v20, %v531_v18 }
 0x1e4   :  { %v412_v22 = vmax.f32 %v409_v21, 0.0 }
 0x1e6   :  { %618 = vmatmul.mubr.f32.vlgmr.msra.gmra.mxu1 %v412_v22 }
 0x2a6   :  { %v502_v24 = vpop.f32.mrf.mxu1 }
 0x2a7   :  { %v503_v25 = vadd.f32 %v532_v23, %v502_v24 }
 0x2a8   :  { %v619_v0 = vpop.f32.mrf.mxu1 }
 0x2a9   :  { %506 = vst [vmem:[#allocation13] sm:$0xff] %v503_v25 }
 0x2aa   :  { %764 = shalt.err (!%p761_p6)
}
 0x2ab   :  { %516 = dma.vmem_to_hbm [thread:$0]  %s514_s22, 128, %s904_s9, [#allocation4]  }
 0x2ac   :  { %781 = dma.done.wait [#allocation4], 128  }
 0x2ad   :  { %782 = vsyncadd [#allocation4], 4294967168 }
 0x2ae   :  { %520 = vsyncpa [#allocation3], 1 }
 0x2af   :  { %521 = vsyncpa [#allocation6], 1 }
 0x2b0   :  { %522 = vsyncpa [#allocation9], 1 }
 0x2b1   :  { %523 = vsyncpa [#allocation12], 1 }
 0x2b2   :  { %524 = vsyncpa [#allocation4], 1 }

</bundles_post_ra>
